<compile_context>
chip_gen: v6e
topology: v6e:2x2x1
jax: 0.10.0
libtpu: 0.0.40
codegen_flags: <defaults>
</compile_context>

<pallas_src>
import functools

import jax
import jax.numpy as jnp
from jax.experimental import pallas as pl
from jax.experimental.pallas import tpu as pltpu


def _round_up(x, m):
    return (x + m - 1) // m * m


# ----------------------------------------------------------------------------
# Kernel bodies
# ----------------------------------------------------------------------------
def _epilogue(h, w2_ref, b2_ref, eps_ref, out_ref, sample):
    """ReLU hidden -> fused [mu|logvar] projection -> optional reparameterize."""
    zp = out_ref.shape[1]                                   # lane-padded Z
    # bf16 operands, f32 MXU accumulation; bias/exp epilogue stays f32.
    proj = jnp.dot(h.astype(jnp.bfloat16), w2_ref[...],
                   preferred_element_type=jnp.float32) + b2_ref[...]
    mu = proj[:, :zp]
    if sample:
        lv = proj[:, zp:]
        std = jnp.exp(0.5 * lv)                             # EUP slot
        out_ref[...] = (mu + eps_ref[...] * std).astype(out_ref.dtype)
    else:
        out_ref[...] = mu.astype(out_ref.dtype)


def _kernel_tiled(x_ref, w1_ref, b1_ref, w2_ref, b2_ref, *rest, sample):
    """grid = (row blocks, K tiles): K-tiled first matmul, f32 VMEM accumulator."""
    if sample:
        eps_ref, out_ref, acc_ref = rest
    else:
        eps_ref = None
        out_ref, acc_ref = rest
    k = pl.program_id(1)

    @pl.when(k == 0)
    def _():
        acc_ref[...] = jnp.zeros_like(acc_ref)

    # In-kernel bf16 cast of the x tile (VPU filler under the MXU); no host copy.
    acc_ref[...] += jnp.dot(x_ref[...].astype(jnp.bfloat16), w1_ref[...],
                            preferred_element_type=jnp.float32)

    @pl.when(k == pl.num_programs(1) - 1)
    def _():
        h = jnp.maximum(acc_ref[...] + b1_ref[...], 0.0)
        _epilogue(h, w2_ref, b2_ref, eps_ref, out_ref, sample)


def _kernel_single(x_ref, w1_ref, b1_ref, w2_ref, b2_ref, *rest, sample):
    """grid = (row blocks,): no K tiling -> no scratch / no pl.when overhead."""
    if sample:
        eps_ref, out_ref = rest
    else:
        eps_ref = None
        (out_ref,) = rest
    h = jnp.dot(x_ref[...].astype(jnp.bfloat16), w1_ref[...],
                preferred_element_type=jnp.float32)
    h = jnp.maximum(h + b1_ref[...], 0.0)
    _epilogue(h, w2_ref, b2_ref, eps_ref, out_ref, sample)


# ----------------------------------------------------------------------------
# Fused forward
# ----------------------------------------------------------------------------
@functools.partial(jax.jit, static_argnames=("bm", "tk", "z_dim", "sample"))
def _representation_forward(x_flat, eps, w1, b1, w2, b2, *, bm, tk, z_dim, sample):
    B, D = x_flat.shape
    Dp, HIDp = w1.shape
    Wout = w2.shape[1]                       # 2*Zp (sample) or Zp (mean)
    Zp = Wout // 2 if sample else Wout
    Bp = _round_up(B, bm)

    # x stays f32 (kernel casts per tile); pad only when the grid needs it.
    if (Bp, Dp) != (B, D):
        x_p = jnp.zeros((Bp, Dp), x_flat.dtype).at[:B, :D].set(x_flat)
    else:
        x_p = x_flat

    num_rows = Bp // bm
    num_k = Dp // tk
    resident = pl.Buffered(1)                # grid-invariant operands: 1 VMEM buffer

    # Explicit VMEM budget (streaming operands double-buffered + resident ones).
    fp = (2 * bm * tk * 4                    # x tiles (f32)
          + (2 if num_k > 1 else 1) * tk * HIDp * 2   # W1 tiles (bf16)
          + HIDp * 4 + Wout * 4              # b1, b2 (single-buffered)
          + HIDp * Wout * 2                  # W2 (bf16, single-buffered)
          + 2 * bm * Zp * 4                  # output tiles
          + (2 * bm * Zp * 4 if sample else 0)         # eps tiles
          + (bm * HIDp * 4 if num_k > 1 else 0))       # accumulator scratch
    vmem_limit = int(min(max(2 * fp + (2 << 20), 16 << 20), 60 << 20))

    args = [x_p, w1, b1, w2, b2]
    if sample:
        if eps.shape != (Bp, Zp):
            eps_p = jnp.zeros((Bp, Zp), jnp.float32).at[:B, :z_dim].set(eps)
        else:
            eps_p = eps
        args.append(eps_p)

    if num_k > 1:
        in_specs = [
            pl.BlockSpec((bm, tk), lambda i, k: (i, k)),                          # x (f32)
            pl.BlockSpec((tk, HIDp), lambda i, k: (k, 0)),                        # W1 (bf16)
            pl.BlockSpec((1, HIDp), lambda i, k: (0, 0), pipeline_mode=resident),  # b1
            pl.BlockSpec((HIDp, Wout), lambda i, k: (0, 0), pipeline_mode=resident),  # [Wmu|Wlv]
            pl.BlockSpec((1, Wout), lambda i, k: (0, 0), pipeline_mode=resident),     # [bmu|blv]
        ]
        if sample:
            in_specs.append(pl.BlockSpec((bm, Zp), lambda i, k: (i, 0)))          # eps
        grid_spec = pltpu.PrefetchScalarGridSpec(
            num_scalar_prefetch=0,
            grid=(num_rows, num_k),
            in_specs=in_specs,
            out_specs=pl.BlockSpec((bm, Zp), lambda i, k: (i, 0)),
            scratch_shapes=[pltpu.VMEM((bm, HIDp), jnp.float32)],
        )
        kernel = functools.partial(_kernel_tiled, sample=sample)
        dims = ("parallel", "arbitrary")
    else:
        in_specs = [
            pl.BlockSpec((bm, tk), lambda i: (i, 0)),                             # x (f32)
            pl.BlockSpec((tk, HIDp), lambda i: (0, 0), pipeline_mode=resident),   # W1
            pl.BlockSpec((1, HIDp), lambda i: (0, 0), pipeline_mode=resident),    # b1
            pl.BlockSpec((HIDp, Wout), lambda i: (0, 0), pipeline_mode=resident),  # [Wmu|Wlv]
            pl.BlockSpec((1, Wout), lambda i: (0, 0), pipeline_mode=resident),     # [bmu|blv]
        ]
        if sample:
            in_specs.append(pl.BlockSpec((bm, Zp), lambda i: (i, 0)))             # eps
        grid_spec = pltpu.PrefetchScalarGridSpec(
            num_scalar_prefetch=0,
            grid=(num_rows,),
            in_specs=in_specs,
            out_specs=pl.BlockSpec((bm, Zp), lambda i: (i, 0)),
            scratch_shapes=[],
        )
        kernel = functools.partial(_kernel_single, sample=sample)
        dims = ("parallel",)

    out = pl.pallas_call(
        kernel,
        out_shape=jax.ShapeDtypeStruct((Bp, Zp), jnp.float32),
        grid_spec=grid_spec,
        compiler_params=pltpu.CompilerParams(
            dimension_semantics=dims,
            vmem_limit_bytes=vmem_limit),
    )(*args)
    return out[:B, :z_dim]


# ----------------------------------------------------------------------------
# Module-equivalent wrapper
# ----------------------------------------------------------------------------
class RepresentationExtractor:
    VALID_MODES = ['mean', 'sample']

    def __init__(self, params, mode='mean'):
        assert mode in self.VALID_MODES, f'`mode` must be one of {self.VALID_MODES}'
        self.mode = mode
        w1, b1, wmu, bmu, wlv, blv = params
        D, HID = w1.shape
        Z = wmu.shape[1]
        self.in_dim = int(D)
        self.z_dim = int(Z)

        HIDp = _round_up(HID, 128)                 # lane-pad hidden dim
        Zp = _round_up(Z, 128)                     # lane-pad latent dim
        Dp = _round_up(D, 128)                     # minimal contraction padding

        # K tile: largest candidate dividing Dp with the double-buffered bf16
        # W1 tile within ~8 MiB (v5e 16 MiB scoped default / v7x 64 MiB friendly).
        tk = 128
        for cand in (2048, 1024, 512, 256, 128):
            if Dp % cand == 0 and 2 * cand * HIDp * 2 <= (8 << 20):
                tk = cand
                break
        self.tk = tk

        # W1 padded once, stored bf16 (dominant HBM stream alongside x).
        w1p = jnp.zeros((Dp, HIDp), jnp.float32).at[:D, :HID].set(w1)
        self.w1 = w1p.astype(jnp.bfloat16)
        self.b1 = jnp.zeros((1, HIDp), jnp.float32).at[0, :HID].set(b1.reshape(-1))

        # Latent projection: mean mode only needs the mu half; sample mode fuses
        # [Wmu | Wlv] into one lane-padded bf16 weight so the output stays lane-dense.
        if self.mode == 'sample':
            w2 = jnp.zeros((HIDp, 2 * Zp), jnp.float32)
            w2 = w2.at[:HID, :Z].set(wmu).at[:HID, Zp:Zp + Z].set(wlv)
            b2 = jnp.zeros((1, 2 * Zp), jnp.float32)
            b2 = b2.at[0, :Z].set(bmu.reshape(-1)).at[0, Zp:Zp + Z].set(blv.reshape(-1))
        else:
            w2 = jnp.zeros((HIDp, Zp), jnp.float32).at[:HID, :Z].set(wmu)
            b2 = jnp.zeros((1, Zp), jnp.float32).at[0, :Z].set(bmu.reshape(-1))
        self.w2 = w2.astype(jnp.bfloat16)
        self.b2 = b2

    def __call__(self, x, rng_key=None):
        B = x.shape[0]
        x_flat = x.reshape(B, -1).astype(jnp.float32)   # torch-style NCHW flatten
        assert x_flat.shape[1] == self.in_dim
        # Row block: >=2 "parallel" row blocks when B >= 32 (v7x megacore split);
        # bm=256 for large batches fills v6e's 256-row MXU.
        if B >= 512:
            bm = 256
        elif B >= 32:
            bm = min(128, _round_up((B + 1) // 2, 16))
        else:
            bm = _round_up(B, 16)
        sample = self.mode == 'sample'
        if sample:
            if rng_key is None:
                raise ValueError("mode='sample' requires an rng_key")
            # torch.randn_like(std): standard-normal noise (host-side keyed PRNG).
            # TODO(synk): generate eps in-kernel (pltpu.prng_seed + prng_random_bits)
            # to drop this [B, Z] input and its DMA entirely.
            eps = jax.random.normal(rng_key, (B, self.z_dim), dtype=jnp.float32)
        else:
            eps = None                                   # mean mode: no eps operand
        return _representation_forward(
            x_flat, eps, self.w1, self.b1, self.w2, self.b2,
            bm=bm, tk=self.tk, z_dim=self.z_dim, sample=sample)


# ----------------------------------------------------------------------------
# Demo / correctness check
# ----------------------------------------------------------------------------
def init_params(key, in_dim, hidden, z_dim):
    k1, k2, k3 = jax.random.split(key, 3)
    w1 = jax.random.normal(k1, (in_dim, hidden), jnp.float32) * 0.02
    b1 = jnp.zeros((1, hidden), jnp.float32)
    wmu = jax.random.normal(k2, (hidden, z_dim), jnp.float32) * 0.02
    bmu = jnp.zeros((1, z_dim), jnp.float32)
    wlv = jax.random.normal(k3, (hidden, z_dim), jnp.float32) * 0.02
    blv = jnp.zeros((1, z_dim), jnp.float32)
    return (w1, b1, wmu, bmu, wlv, blv)


def _encoder_ref(params, x):
    w1, b1, wmu, bmu, wlv, blv = params
    xf = x.reshape(x.shape[0], -1)
    h = jnp.maximum(xf @ w1 + b1, 0.0)
    return h @ wmu + bmu, h @ wlv + blv


if __name__ == "__main__":
    key = jax.random.PRNGKey(0)
    k_params, k_x, k_eps, k_params2, k_x2 = jax.random.split(key, 5)

    # ---- Test 1: [2, 4, 16, 16] input (D=1024 -> single-K fast path) ------
    B, C, H, W = 2, 4, 16, 16
    HID, Z = 32, 16
    x = jax.random.normal(k_x, (B, C, H, W), dtype=jnp.float32)
    params = init_params(k_params, C * H * W, HID, Z)
    mu_ref, lv_ref = _encoder_ref(params, x)

    extractor_mean = RepresentationExtractor(params, mode='mean')
    mu = jax.block_until_ready(extractor_mean(x))

    extractor_sample = RepresentationExtractor(params, mode='sample')
    z = jax.block_until_ready(extractor_sample(x, rng_key=k_eps))
    eps_ref = jax.random.normal(k_eps, (B, Z), dtype=jnp.float32)
    z_ref = mu_ref + eps_ref * jnp.exp(0.5 * lv_ref)

    assert mu.shape == (B, Z) and z.shape == (B, Z)
    assert bool(jnp.all(jnp.isfinite(mu))) and bool(jnp.all(jnp.isfinite(z)))
    assert bool(jnp.allclose(mu, mu_ref, atol=2e-2, rtol=2e-2)), "mu mismatch"
    assert bool(jnp.allclose(z, z_ref, atol=2e-2, rtol=2e-2)), "sample mismatch"

    # ---- Test 2: larger flattened dim (D=4096 -> 2 K tiles, accumulator path)
    B2, C2, H2, W2s = 2, 4, 32, 32
    x2 = jax.random.normal(k_x2, (B2, C2, H2, W2s), dtype=jnp.float32)
    params2 = init_params(k_params2, C2 * H2 * W2s, HID, Z)
    mu2_ref, _ = _encoder_ref(params2, x2)
    mu2 = jax.block_until_ready(RepresentationExtractor(params2, mode='mean')(x2))
    assert mu2.shape == (B2, Z) and bool(jnp.all(jnp.isfinite(mu2)))
    assert bool(jnp.allclose(mu2, mu2_ref, atol=3e-2, rtol=3e-2)), "tiled mu mismatch"

    print("KERNEL_OK")
</pallas_src>

<mosaic_0001>
module attributes {stable_mosaic.version = 11 : i64} {
  func.func @_kernel_single(%arg0: i32, %arg1: memref<16x1024xf32, #tpu.memory_space<vmem>>, %arg2: memref<1024x128xbf16, #tpu.memory_space<vmem>>, %arg3: memref<1x128xf32, #tpu.memory_space<vmem>>, %arg4: memref<128x128xbf16, #tpu.memory_space<vmem>>, %arg5: memref<1x128xf32, #tpu.memory_space<vmem>>, %arg6: memref<16x128xf32, #tpu.memory_space<vmem>>) attributes {dimension_semantics = [#tpu.dimension_semantics<parallel>], iteration_bounds = array<i64: 1>, scalar_prefetch = 0 : i64, scratch_operands = 0 : i64, tpu.core_type = #tpu.core_type<tc>, window_params = [{transform_indices = @transform_0, window_bounds = array<i64: 16, 1024>}, {pipeline_mode = #tpu.pipeline_mode<synchronous>, transform_indices = @transform_1, window_bounds = array<i64: 1024, 128>}, {pipeline_mode = #tpu.pipeline_mode<synchronous>, transform_indices = @transform_2, window_bounds = array<i64: 1, 128>}, {pipeline_mode = #tpu.pipeline_mode<synchronous>, transform_indices = @transform_3, window_bounds = array<i64: 128, 128>}, {pipeline_mode = #tpu.pipeline_mode<synchronous>, transform_indices = @transform_4, window_bounds = array<i64: 1, 128>}, {transform_indices = @transform_5, window_bounds = array<i64: 16, 128>}]} {
    %c0 = arith.constant 0 : index
    %c0_0 = arith.constant 0 : index
    %0 = vector.load %arg1[%c0, %c0_0] : memref<16x1024xf32, #tpu.memory_space<vmem>>, vector<16x1024xf32>
    %1 = arith.truncf %0 : vector<16x1024xf32> to vector<16x1024xbf16>
    %c0_1 = arith.constant 0 : index
    %c0_2 = arith.constant 0 : index
    %2 = vector.load %arg2[%c0_1, %c0_2] : memref<1024x128xbf16, #tpu.memory_space<vmem>>, vector<1024x128xbf16>
    %cst = arith.constant dense<0.000000e+00> : vector<16x128xf32>
    %3 = tpu.matmul %1, %2, %cst {dimension_numbers = #tpu.dot_dimension_numbers<[1], [0], [0], [1], [0, 0, 1, 1], [], []>} : vector<16x1024xbf16>, vector<1024x128xbf16>, vector<16x128xf32> -> vector<16x128xf32>
    %c0_3 = arith.constant 0 : index
    %c0_4 = arith.constant 0 : index
    %4 = vector.load %arg3[%c0_3, %c0_4] : memref<1x128xf32, #tpu.memory_space<vmem>>, vector<1x128xf32>
    %5 = vector.broadcast %4 : vector<1x128xf32> to vector<16x128xf32>
    %6 = arith.addf %3, %5 : vector<16x128xf32>
    %cst_5 = arith.constant 0.000000e+00 : f32
    %7 = vector.broadcast %cst_5 : f32 to vector<16x128xf32>
    %8 = arith.maximumf %6, %7 : vector<16x128xf32>
    %9 = arith.truncf %8 : vector<16x128xf32> to vector<16x128xbf16>
    %c0_6 = arith.constant 0 : index
    %c0_7 = arith.constant 0 : index
    %10 = vector.load %arg4[%c0_6, %c0_7] : memref<128x128xbf16, #tpu.memory_space<vmem>>, vector<128x128xbf16>
    %cst_8 = arith.constant dense<0.000000e+00> : vector<16x128xf32>
    %11 = tpu.matmul %9, %10, %cst_8 {dimension_numbers = #tpu.dot_dimension_numbers<[1], [0], [0], [1], [0, 0, 1, 1], [], []>} : vector<16x128xbf16>, vector<128x128xbf16>, vector<16x128xf32> -> vector<16x128xf32>
    %c0_9 = arith.constant 0 : index
    %c0_10 = arith.constant 0 : index
    %12 = vector.load %arg5[%c0_9, %c0_10] : memref<1x128xf32, #tpu.memory_space<vmem>>, vector<1x128xf32>
    %13 = vector.broadcast %12 : vector<1x128xf32> to vector<16x128xf32>
    %14 = arith.addf %11, %13 : vector<16x128xf32>
    %c0_11 = arith.constant 0 : index
    %c0_12 = arith.constant 0 : index
    %15 = vector.load %arg6[%c0_11, %c0_12] : memref<16x128xf32, #tpu.memory_space<vmem>>, vector<16x128xf32>
    tpu.vector_store %arg6[%c0_11, %c0_12], %14 {strides = array<i32>} : memref<16x128xf32, #tpu.memory_space<vmem>>, vector<16x128xf32>,
    return
  }
  func.func @transform_0(%arg0: i32) -> (i32, i32) {
    %c0_i32 = arith.constant 0 : i32
    %c0_i32_0 = arith.constant 0 : i32
    return %arg0, %c0_i32 : i32, i32
  }
  func.func @transform_1(%arg0: i32) -> (i32, i32) {
    %c0_i32 = arith.constant 0 : i32
    %c0_i32_0 = arith.constant 0 : i32
    %c0_i32_1 = arith.constant 0 : i32
    return %c0_i32, %c0_i32_0 : i32, i32
  }
  func.func @transform_2(%arg0: i32) -> (i32, i32) {
    %c0_i32 = arith.constant 0 : i32
    %c0_i32_0 = arith.constant 0 : i32
    %c0_i32_1 = arith.constant 0 : i32
    return %c0_i32, %c0_i32_0 : i32, i32
  }
  func.func @transform_3(%arg0: i32) -> (i32, i32) {
    %c0_i32 = arith.constant 0 : i32
    %c0_i32_0 = arith.constant 0 : i32
    %c0_i32_1 = arith.constant 0 : i32
    return %c0_i32, %c0_i32_0 : i32, i32
  }
  func.func @transform_4(%arg0: i32) -> (i32, i32) {
    %c0_i32 = arith.constant 0 : i32
    %c0_i32_0 = arith.constant 0 : i32
    %c0_i32_1 = arith.constant 0 : i32
    return %c0_i32, %c0_i32_0 : i32, i32
  }
  func.func @transform_5(%arg0: i32) -> (i32, i32) {
    %c0_i32 = arith.constant 0 : i32
    %c0_i32_0 = arith.constant 0 : i32
    return %arg0, %c0_i32 : i32, i32
  }
}

</mosaic_0001>

<bundles_post_ra>
// kernel: _representation_forward.1
= control target key start
LH: loop header
LB: loop body
LE: loop exit
PB: predicated region body
PF: predicated region fallthrough
CT: control target
= control target key end

     0   :  { %10 = vsyncpa [#allocation3], 0  ;;  %s1154_s18 = smov [#allocation2]   ;;  %s1276_s0 = inlined_call_operand.vmem [shape: f32[16,1024], index: 0, kind: input, shape index: {}]   ;;  %s1277_s1 = inlined_call_operand.hbm [shape: bf16[1024,128], index: 1, kind: input, shape index: {}]   ;;  %s1278_s2 = inlined_call_operand.vmem [shape: f32[1,128], index: 2, kind: input, shape index: {}]   ;;  %s1279_s3 = inlined_call_operand.vmem [shape: bf16[128,128], index: 3, kind: input, shape index: {}]   ;;  %s1280_s4 = inlined_call_operand.vmem [shape: f32[1,128], index: 4, kind: input, shape index: {}]   ;;  %s1281_s5 = inlined_call_operand.vmem [shape: f32[16,128], index: 5, kind: output, shape index: {}]  }
   0x1   :  { %s18_s19 = sshll.u32 %s1154_s18, 4  ;;  %s19_s19 = int_to_ptr.vmem [resolvable:$true] %s18_s19 }
   0x2   :  { %s1140_s20 = scalar_lea.vmem %s19_s19, 8192  ;;  %p1145_p1 = scmp.lt.s32.totalorder %s19_s19, %s19_s19 }
   0x3   :  { %p1141_p0 = scmp.ne.s32.totalorder %s19_s19, %s1140_s20  ;;  %p1146_p2 = scmp.lt.s32.totalorder %s1140_s20, %s1140_s20 }
   0x5   :  { %p1147_p3 = por %p1146_p2, %p1145_p1 }
   0x7   :  { %p1148_p4 = pnand %p1147_p3, %p1141_p0 }
   0x9   :  { %1151 = shalt.err (!%p1148_p4)
}
   0xa   :  { %s1155_s21 = smov 64   ;;  %s1156_s22 = smov 4  }
   0xb   :  { %24 = dma.hbm_to_vmem [thread:$0]  %s1277_s1, 8192, %s19_s19, [#allocation3], %s1155_s21, %s1155_s21, %s1156_s22  }
   0xc   :  { %1152 = dma.done.wait [#allocation3], 8192  }
   0xd   :  { %1153 = vsyncadd [#allocation3], 4294959104  ;;  %v1060_v0 = vld [vmem:[#allocation2 + $0x78] sm:$0xff]   ;;  %v1064_v4 = vld [vmem:[#allocation2 + $0x70] sm:$0xff]   ;;  %vm1158_vm0 = vmmov 0  }
   0xe   :  { %v1061_v1 = vld [vmem:[#allocation2 + $0xf8] sm:$0xff]   ;;  %938 = vmatprep.subr.bf16.mxu0 %v1060_v0  ;;  %v1065_v5 = vld [vmem:[#allocation2 + $0xf0] sm:$0xff]   ;;  %v1068_v8 = vld [vmem:[#allocation2 + $0x68] sm:$0xff]  }
   0xf   :  { %v1062_v2 = vld [vmem:[#allocation2 + $0x38] sm:$0xff]   ;;  %960 = vmatprep.subr.bf16.mxu1 %v1061_v1  ;;  %v1066_v6 = vld [vmem:[#allocation2 + $0x30] sm:$0xff]   ;;  %v1069_v9 = vld [vmem:[#allocation2 + $0xe8] sm:$0xff]  }
  0x10   :  { %v1063_v3 = vld [vmem:[#allocation2 + $0xb8] sm:$0xff]   ;;  %939 = vmatpush3.bf16.msra.mxu0 %v1062_v2  ;;  %v1067_v7 = vld [vmem:[#allocation2 + $0xb0] sm:$0xff]   ;;  %v1070_v10 = vld [vmem:[#allocation2 + $0x28] sm:$0xff]  }
  0x11   :  { %961 = vmatpush3.bf16.msra.mxu1 %v1063_v3  ;;  %940 = vmatprep.subr.bf16.mxu0 %v1064_v4  ;;  %v1071_v11 = vld [vmem:[#allocation2 + $0xa8] sm:$0xff]   ;;  %v1072_v12 = vld [vmem:[#allocation2 + $0x60] sm:$0xff]   ;;  %v1076_v16 = vld [vmem:[#allocation2 + $0x58] sm:$0xff]  }
  0x12   :  { %962 = vmatprep.subr.bf16.mxu1 %v1065_v5  ;;  %v1073_v13 = vld [vmem:[#allocation2 + $0xe0] sm:$0xff]   ;;  %v1077_v17 = vld [vmem:[#allocation2 + $0xd8] sm:$0xff]   ;;  %v1080_v20 = vld [vmem:[#allocation2 + $0x50] sm:$0xff]  }
  0x13   :  { %v1074_v14 = vld [vmem:[#allocation2 + $0x20] sm:$0xff]   ;;  %v1078_v18 = vld [vmem:[#allocation2 + $0x18] sm:$0xff]   ;;  %v1081_v21 = vld [vmem:[#allocation2 + $0xd0] sm:$0xff]  }
  0x14   :  { %941 = vmatpush3.bf16.msra.mxu0 %v1066_v6  ;;  %v1075_v15 = vld [vmem:[#allocation2 + $0xa0] sm:$0xff]   ;;  %v1079_v19 = vld [vmem:[#allocation2 + $0x98] sm:$0xff]   ;;  %v1082_v22 = vld [vmem:[#allocation2 + $0x10] sm:$0xff]  }
  0x15   :  { %963 = vmatpush3.bf16.msra.mxu1 %v1067_v7  ;;  %942 = vmatprep.subr.bf16.mxu0 %v1068_v8  ;;  %v1083_v23 = vld [vmem:[#allocation2 + $0x90] sm:$0xff]   ;;  %v1084_v24 = vld [vmem:[#allocation2 + $0x48] sm:$0xff]   ;;  %v1088_v28 = vld [vmem:[#allocation2 + $0x40] sm:$0xff]  }
  0x16   :  { %964 = vmatprep.subr.bf16.mxu1 %v1069_v9  ;;  %v1085_v25 = vld [vmem:[#allocation2 + $0xc8] sm:$0xff]   ;;  %v1089_v29 = vld [vmem:[#allocation2 + $0xc0] sm:$0xff]   ;;  %v38_v34 = vld [vmem:[%s1276_s0 + $0x18] sm:$0xff] }
  0x17   :  { %v1086_v26 = vld [vmem:[#allocation2 + $0x8] sm:$0xff]   ;;  %v1090_v30 = vld [vmem:[#allocation2] sm:$0xff]   ;;  %v46_v36 = vld [vmem:[%s1276_s0 + $0x58] sm:$0xff] }
  0x18   :  { %943 = vmatpush3.bf16.msra.mxu0 %v1070_v10  ;;  %v1087_v27 = vld [vmem:[#allocation2 + $0x88] sm:$0xff]   ;;  %v1091_v31 = vld [vmem:[#allocation2 + $0x80] sm:$0xff]   ;;  %v54_v39 = vpack.c.bf16 %v46_v36, %v38_v34  ;;  %v37_v41 = vld [vmem:[%s1276_s0 + $0x10] sm:$0xff] }
  0x19   :  { %965 = vmatpush3.bf16.msra.mxu1 %v1071_v11  ;;  %944 = vmatprep.subr.bf16.mxu0 %v1072_v12  ;;  %v36_v32 = vld [vmem:[%s1276_s0 + $0x8] sm:$0xff]  ;;  %v35_v37 = vld [vmem:[%s1276_s0] sm:$0xff]  ;;  %v45_v42 = vld [vmem:[%s1276_s0 + $0x50] sm:$0xff] }
  0x1a   :  { %966 = vmatprep.subr.bf16.mxu1 %v1073_v13  ;;  %v44_v33 = vld [vmem:[%s1276_s0 + $0x48] sm:$0xff]  ;;  %v43_v38 = vld [vmem:[%s1276_s0 + $0x40] sm:$0xff]  ;;  %v53_v43 = vpack.c.bf16 %v45_v42, %v37_v41  ;;  %v1092_v44 = vld [vmem:[#allocation2 + $0x178] sm:$0xff]   ;;  %651 = vmatprep.mubr.bf16.mxu1 %v54_v39 }
  0x1b   :  { %v52_v35 = vpack.c.bf16 %v44_v33, %v36_v32  ;;  %v51_v40 = vpack.c.bf16 %v43_v38, %v35_v37  ;;  %v1093_v45 = vld [vmem:[#allocation2 + $0x1f8] sm:$0xff]   ;;  %v1096_v48 = vld [vmem:[#allocation2 + $0x170] sm:$0xff]   ;;  %v1100_v52 = vld [vmem:[#allocation2 + $0x168] sm:$0xff]  }
  0x1c   :  { %945 = vmatpush3.bf16.msra.mxu0 %v1074_v14  ;;  %v1094_v46 = vld [vmem:[#allocation2 + $0x138] sm:$0xff]   ;;  %v1097_v49 = vld [vmem:[#allocation2 + $0x1f0] sm:$0xff]   ;;  %v1101_v53 = vld [vmem:[#allocation2 + $0x1e8] sm:$0xff]  }
  0x1d   :  { %967 = vmatpush3.bf16.msra.mxu1 %v1075_v15  ;;  %946 = vmatprep.subr.bf16.mxu0 %v1076_v16  ;;  %v1095_v47 = vld [vmem:[#allocation2 + $0x1b8] sm:$0xff]   ;;  %v1098_v50 = vld [vmem:[#allocation2 + $0x130] sm:$0xff]   ;;  %v1102_v54 = vld [vmem:[#allocation2 + $0x128] sm:$0xff]  }
  0x1e   :  { %968 = vmatprep.subr.bf16.mxu1 %v1077_v17  ;;  %610 = vmatprep.mubr.bf16.mxu0 %v52_v35  ;;  %v1099_v51 = vld [vmem:[#allocation2 + $0x1b0] sm:$0xff]   ;;  %v1103_v55 = vld [vmem:[#allocation2 + $0x1a8] sm:$0xff]   ;;  %v1104_v56 = vld [vmem:[#allocation2 + $0x160] sm:$0xff]  }
  0x1f   :  { %v1105_v57 = vld [vmem:[#allocation2 + $0x1e0] sm:$0xff]   ;;  %v1108_v60 = vld [vmem:[#allocation2 + $0x158] sm:$0xff]   ;;  %v1112_v0 = vld [vmem:[#allocation2 + $0x150] sm:$0xff]  }
  0x20   :  { %947 = vmatpush3.bf16.msra.mxu0 %v1078_v18  ;;  %v1106_v58 = vld [vmem:[#allocation2 + $0x120] sm:$0xff]   ;;  %v1109_v61 = vld [vmem:[#allocation2 + $0x1d8] sm:$0xff]   ;;  %v1113_v1 = vld [vmem:[#allocation2 + $0x1d0] sm:$0xff]  }
  0x21   :  { %969 = vmatpush3.bf16.msra.mxu1 %v1079_v19  ;;  %948 = vmatprep.subr.bf16.mxu0 %v1080_v20  ;;  %v1107_v59 = vld [vmem:[#allocation2 + $0x1a0] sm:$0xff]   ;;  %v1110_v62 = vld [vmem:[#allocation2 + $0x118] sm:$0xff]   ;;  %v1114_v2 = vld [vmem:[#allocation2 + $0x110] sm:$0xff]  }
  0x22   :  { %970 = vmatprep.subr.bf16.mxu1 %v1081_v21  ;;  %v1111_v63 = vld [vmem:[#allocation2 + $0x198] sm:$0xff]   ;;  %v1115_v3 = vld [vmem:[#allocation2 + $0x190] sm:$0xff]   ;;  %v1116_v4 = vld [vmem:[#allocation2 + $0x148] sm:$0xff]  }
  0x23   :  { %v1117_v5 = vld [vmem:[#allocation2 + $0x1c8] sm:$0xff]   ;;  %v1120_v8 = vld [vmem:[#allocation2 + $0x140] sm:$0xff]   ;;  %v42_v14 = vld [vmem:[%s1276_s0 + $0x38] sm:$0xff] }
  0x24   :  { %949 = vmatpush3.bf16.msra.mxu0 %v1082_v22  ;;  %v1118_v6 = vld [vmem:[#allocation2 + $0x108] sm:$0xff]   ;;  %v1121_v9 = vld [vmem:[#allocation2 + $0x1c0] sm:$0xff]   ;;  %v50_v15 = vld [vmem:[%s1276_s0 + $0x78] sm:$0xff] }
  0x25   :  { %971 = vmatpush3.bf16.msra.mxu1 %v1083_v23  ;;  %950 = vmatprep.subr.bf16.mxu0 %v1084_v24  ;;  %v1119_v7 = vld [vmem:[#allocation2 + $0x188] sm:$0xff]   ;;  %v1122_v10 = vld [vmem:[#allocation2 + $0x100] sm:$0xff]   ;;  %v58_v17 = vpack.c.bf16 %v50_v15, %v42_v14  ;;  %v41_v20 = vld [vmem:[%s1276_s0 + $0x30] sm:$0xff] }
  0x26   :  { %972 = vmatprep.subr.bf16.mxu1 %v1085_v25  ;;  %v1123_v11 = vld [vmem:[#allocation2 + $0x180] sm:$0xff]   ;;  %v40_v12 = vld [vmem:[%s1276_s0 + $0x28] sm:$0xff]  ;;  %v49_v22 = vld [vmem:[%s1276_s0 + $0x70] sm:$0xff]  ;;  %v1157_v25 = vmov 0.0  }
  0x27   :  { %v48_v13 = vld [vmem:[%s1276_s0 + $0x68] sm:$0xff]  ;;  %v39_v18 = vld [vmem:[%s1276_s0 + $0x20] sm:$0xff]  ;;  %v57_v23 = vpack.c.bf16 %v49_v22, %v41_v20  ;;  %v1124_v24 = vld [vmem:[%s1279_s3 + $0x38] sm:$0xff]  }
  0x28   :  { %951 = vmatpush3.bf16.msra.mxu0 %v1086_v26  ;;  %v56_v16 = vpack.c.bf16 %v48_v13, %v40_v12  ;;  %v47_v19 = vld [vmem:[%s1276_s0 + $0x60] sm:$0xff]  ;;  %v1125_v26 = vld [vmem:[%s1279_s3 + $0x30] sm:$0xff]  }
  0x29   :  { %973 = vmatpush3.bf16.msra.mxu1 %v1087_v27  ;;  %952 = vmatprep.subr.bf16.mxu0 %v1088_v28  ;;  %v55_v21 = vpack.c.bf16 %v47_v19, %v39_v18  ;;  %v1126_v27 = vld [vmem:[%s1279_s3 + $0x28] sm:$0xff]   ;;  %v1127_v28 = vld [vmem:[%s1279_s3 + $0x20] sm:$0xff]  }
  0x2a   :  { %974 = vmatprep.subr.bf16.mxu1 %v1089_v29  ;;  %v1128_v29 = vld [vmem:[%s1279_s3 + $0x18] sm:$0xff]   ;;  %v1131_v32 = vld [vmem:[%s1279_s3] sm:$0xff]  }
  0x2c   :  { %953 = vmatpush3.bf16.msra.mxu0 %v1090_v30  ;;  %v1129_v30 = vld [vmem:[%s1279_s3 + $0x10] sm:$0xff]  }
  0x2d   :  { %975 = vmatpush3.bf16.msra.mxu1 %v1091_v31  ;;  %982 = vmatprep.subr.bf16.mxu0 %v1092_v44  ;;  %v1130_v31 = vld [vmem:[%s1279_s3 + $0x8] sm:$0xff]  }
  0x2e   :  { %1004 = vmatprep.subr.bf16.mxu1 %v1093_v45 }
  0x2f   :  { %611 = vmatmul.mubr.bf16.vlgmr.msra.gmra.mxu0 %v51_v40  ;;  %v864_v40 = vld [vmem:[%s1278_s2] ss:$0 sm:$0xff] }
  0x30   :  { %652 = vmatmul.mubr.bf16.vlgmr.msra.gmra.mxu1 %v53_v43  ;;  %983 = vmatpush3.bf16.msra.mxu0 %v1094_v46 }
  0x31   :  { %1005 = vmatpush3.bf16.msra.mxu1 %v1095_v47  ;;  %984 = vmatprep.subr.bf16.mxu0 %v1096_v48 }
  0x32   :  { %1006 = vmatprep.subr.bf16.mxu1 %v1097_v49  ;;  %692 = vmatprep.mubr.bf16.mxu0 %v56_v16 }
  0x33   :  { %733 = vmatprep.mubr.bf16.mxu1 %v58_v17 }
  0x34   :  { %985 = vmatpush3.bf16.msra.mxu0 %v1098_v50 }
  0x35   :  { %1007 = vmatpush3.bf16.msra.mxu1 %v1099_v51  ;;  %986 = vmatprep.subr.bf16.mxu0 %v1100_v52 }
  0x36   :  { %1008 = vmatprep.subr.bf16.mxu1 %v1101_v53 }
  0x38   :  { %987 = vmatpush3.bf16.msra.mxu0 %v1102_v54 }
  0x39   :  { %1009 = vmatpush3.bf16.msra.mxu1 %v1103_v55  ;;  %988 = vmatprep.subr.bf16.mxu0 %v1104_v56 }
  0x3a   :  { %1010 = vmatprep.subr.bf16.mxu1 %v1105_v57 }
  0x3c   :  { %989 = vmatpush3.bf16.msra.mxu0 %v1106_v58 }
  0x3d   :  { %1011 = vmatpush3.bf16.msra.mxu1 %v1107_v59  ;;  %990 = vmatprep.subr.bf16.mxu0 %v1108_v60 }
  0x3e   :  { %1012 = vmatprep.subr.bf16.mxu1 %v1109_v61 }
  0x40   :  { %991 = vmatpush3.bf16.msra.mxu0 %v1110_v62 }
  0x41   :  { %1013 = vmatpush3.bf16.msra.mxu1 %v1111_v63  ;;  %992 = vmatprep.subr.bf16.mxu0 %v1112_v0 }
  0x42   :  { %1014 = vmatprep.subr.bf16.mxu1 %v1113_v1 }
  0x44   :  { %993 = vmatpush3.bf16.msra.mxu0 %v1114_v2 }
  0x45   :  { %1015 = vmatpush3.bf16.msra.mxu1 %v1115_v3  ;;  %994 = vmatprep.subr.bf16.mxu0 %v1116_v4 }
  0x46   :  { %1016 = vmatprep.subr.bf16.mxu1 %v1117_v5  ;;  %v929_v5 = vld [vmem:[%s1280_s4] ss:$0 sm:$0xff] }
  0x48   :  { %995 = vmatpush3.bf16.msra.mxu0 %v1118_v6 }
  0x49   :  { %1017 = vmatpush3.bf16.msra.mxu1 %v1119_v7  ;;  %996 = vmatprep.subr.bf16.mxu0 %v1120_v8 }
  0x4a   :  { %1018 = vmatprep.subr.bf16.mxu1 %v1121_v9 }
  0x4c   :  { %997 = vmatpush3.bf16.msra.mxu0 %v1122_v10 }
  0x4d   :  { %1019 = vmatpush3.bf16.msra.mxu1 %v1123_v11  ;;  %1035 = vmatprep.subr.bf16.mxu0 %v1157_v25 }
  0x4f   :  { %693 = vmatmul.mubr.bf16.vlgmr.msra.gmra.mxu0 %v55_v21 }
  0x50   :  { %734 = vmatmul.mubr.bf16.vlgmr.msra.gmra.mxu1 %v57_v23  ;;  %1036 = vmatpush3.bf16.msra.mxu0 %v1124_v24 }
  0x51   :  { %1037 = vmatprep.subr.bf16.mxu0 %v1157_v25  ;;  %1051 = vmatprep.mubr.msk.bf16.mxu0 %vm1158_vm0, %v1157_v25 }
  0x54   :  { %1038 = vmatpush3.bf16.msra.mxu0 %v1125_v26 }
  0x55   :  { %1039 = vmatprep.subr.bf16.mxu0 %v1157_v25 }
  0x58   :  { %1040 = vmatpush3.bf16.msra.mxu0 %v1126_v27 }
  0x59   :  { %1041 = vmatprep.subr.bf16.mxu0 %v1157_v25 }
  0x5c   :  { %1042 = vmatpush3.bf16.msra.mxu0 %v1127_v28 }
  0x5d   :  { %1043 = vmatprep.subr.bf16.mxu0 %v1157_v25 }
  0x60   :  { %1044 = vmatpush3.bf16.msra.mxu0 %v1128_v29 }
  0x61   :  { %1045 = vmatprep.subr.bf16.mxu0 %v1157_v25 }
  0x64   :  { %1046 = vmatpush3.bf16.msra.mxu0 %v1129_v30 }
  0x65   :  { %1047 = vmatprep.subr.bf16.mxu0 %v1157_v25 }
  0x68   :  { %1048 = vmatpush3.bf16.msra.mxu0 %v1130_v31 }
  0x69   :  { %1049 = vmatprep.subr.bf16.mxu0 %v1157_v25 }
  0x6c   :  { %1050 = vmatpush3.bf16.msra.mxu0 %v1131_v32 }
  0xef   :  { %v954_v33 = vpop.f32.mrf.mxu0 }
  0xf0   :  { %v976_v34 = vpop.f32.mrf.mxu1 }
  0xf1   :  { %v955_v35 = vpop.f32.mrf.mxu0 }
  0xf2   :  { %v977_v36 = vpop.f32.mrf.mxu1  ;;  %v956_v38 = vadd.f32 %v955_v35, %v954_v33 }
  0xf3   :  { %v957_v37 = vpop.f32.mrf.mxu0  ;;  %v978_v43 = vadd.f32 %v977_v36, %v976_v34 }
  0xf4   :  { %v979_v39 = vpop.f32.mrf.mxu1  ;;  %v613_v42 = vadd.f32 %v956_v38, %v864_v40 }
  0xf5   :  { %v958_v41 = vpop.f32.mrf.mxu0 }
  0xf6   :  { %v959_v44 = vadd.f32 %v958_v41, %v957_v37  ;;  %v980_v45 = vpop.f32.mrf.mxu1  ;;  %v654_v49 = vadd.f32 %v978_v43, %v613_v42 }
  0xf7   :  { %v981_v54 = vadd.f32 %v980_v45, %v979_v39 }
  0xf8   :  { %v616_v50 = vadd.f32 %v959_v44, %v864_v40 }
  0xfa   :  { %v657_v58 = vadd.f32 %v981_v54, %v616_v50 }
 0x10f   :  { %v998_v46 = vpop.f32.mrf.mxu0 }
 0x110   :  { %v1020_v47 = vpop.f32.mrf.mxu1 }
 0x111   :  { %v999_v48 = vpop.f32.mrf.mxu0 }
 0x112   :  { %v1000_v51 = vadd.f32 %v999_v48, %v998_v46  ;;  %v1021_v52 = vpop.f32.mrf.mxu1 }
 0x113   :  { %v1001_v53 = vpop.f32.mrf.mxu0  ;;  %v1022_v59 = vadd.f32 %v1021_v52, %v1020_v47 }
 0x114   :  { %v695_v55 = vadd.f32 %v1000_v51, %v654_v49  ;;  %v1023_v56 = vpop.f32.mrf.mxu1 }
 0x115   :  { %v1002_v57 = vpop.f32.mrf.mxu0 }
 0x116   :  { %v1003_v60 = vadd.f32 %v1002_v57, %v1001_v53  ;;  %v1024_v61 = vpop.f32.mrf.mxu1  ;;  %v736_v62 = vadd.f32 %v1022_v59, %v695_v55 }
 0x117   :  { %v1025_v0 = vadd.f32 %v1024_v61, %v1023_v56 }
 0x118   :  { %v698_v63 = vadd.f32 %v1003_v60, %v657_v58  ;;  %v742_v2 = vmax.f32 %v736_v62, 0.0 }
 0x11a   :  { %v739_v1 = vadd.f32 %v1025_v0, %v698_v63 }
 0x11c   :  { %v743_v3 = vmax.f32 %v739_v1, 0.0 }
 0x11e   :  { %v744_v4 = vpack.c.bf16 %v743_v3, %v742_v2 }
 0x120   :  { %1052 = vmatmul.mubr.bf16.vlgmr.msra.gmra.mxu0 %v744_v4 }
 0x1e0   :  { %v850_v6 = vpop.f32.mrf.mxu0 }
 0x1e1   :  { %v851_v7 = vadd.f32 %v929_v5, %v850_v6 }
 0x1e2   :  { %v1053_v8 = vpop.f32.mrf.mxu0 }
 0x1e3   :  { %857 = vst [vmem:[%s1281_s5] sm:$0xff] %v851_v7 }
 0x1e4   :  { %v853_v9 = vpop.f32.mrf.mxu0 }
 0x1e5   :  { %v854_v10 = vadd.f32 %v929_v5, %v853_v9 }
 0x1e6   :  { %v1054_v11 = vpop.f32.mrf.mxu0 }
 0x1e7   :  { %858 = vst [vmem:[%s1281_s5 + $0x8] sm:$0xff] %v854_v10 }
 0x1e8   :  { %863 = vsyncpa [#allocation3], 1 }

</bundles_post_ra>
